<compile_context>
chip_gen: v5e
topology: v5e:2x2
jax: 0.10.0
libtpu: 0.0.40
codegen_flags: <defaults>
</compile_context>

<pallas_src>
import jax
import jax.numpy as jnp
from jax.experimental import pallas as pl
from jax.experimental.pallas import tpu as pltpu

HIDDEN = 6
TB = 128   # batch tile on the lane axis (128-wide vregs, unmasked stores)


def rnn_fc_kernel(x_ref, wih_ref, whh_ref, b_ref, wfc_ref, bfc_ref, out_ref,
                  pre_ref):
    # x_ref:   (D, T*TB)   batch-on-lanes, column = t*TB + local_batch
    # wih_ref: (H, D)      W_ih
    # whh_ref: (H, H)      W_hh
    # b_ref:   (H, 1)      b_ih + b_hh
    # wfc_ref: (1, H)      W_fc
    # bfc_ref: (1,)        b_fc (SMEM scalar)
    # out_ref: (1, TB)     lane-dense output block
    # pre_ref: (H, T*TB)   VMEM scratch for the hoisted projection
    tb = out_ref.shape[1]
    ttb = x_ref.shape[1]
    t_steps = ttb // tb
    h_dim = whh_ref.shape[0]

    # (1) Hoisted input projection: one lane-dense MXU matmul + one bias add,
    #     outside the serial chain.  Staged in VMEM scratch to bound live range.
    pre_ref[...] = (jnp.dot(wih_ref[...], x_ref[...],
                            preferred_element_type=jnp.float32)
                    + b_ref[...])                               # (H, T*TB)

    whh = whh_ref[...]                                          # (H, H), resident

    # (2) Serial recurrence; h carried as (H, TB) in registers (batch on lanes).
    #     Recurrent update on the VPU as H broadcast-FMAs (rank-1 outer products):
    #       h_new[i, b] = tanh(pre_t[i, b] + sum_j W_hh[i, j] * h[j, b])
    #     so the MXU (and its result-FIFO latency) stays off the critical path.
    h = jnp.zeros((h_dim, tb), jnp.float32)
    for t in range(t_steps):
        acc = pre_ref[:, t * tb:(t + 1) * tb]                   # static, 128-aligned
        for j in range(h_dim):
            acc = acc + whh[:, j:j + 1] * h[j:j + 1, :]
        h = jnp.tanh(acc)

    # (3) fc on the last hidden state: (1,H)@(H,TB) + b_fc; lane-dense store.
    out_ref[...] = (jnp.dot(wfc_ref[...], h,
                            preferred_element_type=jnp.float32)
                    + bfc_ref[0])


def rnn_model_forward(x, params):
    """x: (B, T, D) batch_first, matching PyTorch. Returns (B, 1)."""
    w_ih, w_hh, b_ih, b_hh, w_fc, b_fc = (
        params["w_ih"], params["w_hh"], params["b_ih"],
        params["b_hh"], params["w_fc"], params["b_fc"])

    B, T, D = x.shape
    H = HIDDEN
    nb = pl.cdiv(B, TB)
    Bp = nb * TB

    # ---- glue: layout plumbing only ----
    x_f = x.astype(jnp.float32)
    x_p = jnp.pad(x_f, ((0, Bp - B), (0, 0), (0, 0)))           # (Bp, T, D)
    # Batch-on-lanes packing: per tile i, column t*TB + b holds x[i*TB+b, t, :].
    x_packed = (x_p.reshape(nb, TB, T, D)
                    .transpose(3, 0, 2, 1)                      # (D, nb, T, TB)
                    .reshape(D, nb * T * TB))                   # (D, nb*T*TB)

    wih = w_ih.astype(jnp.float32)                              # (H, D)
    whh = w_hh.astype(jnp.float32)                              # (H, H)
    b_comb = (b_ih + b_hh).reshape(H, 1).astype(jnp.float32)    # (H, 1)
    wfc = w_fc.astype(jnp.float32)                              # (1, H)
    bfc = b_fc.reshape(1).astype(jnp.float32)                   # (1,) -> SMEM

    out_p = pl.pallas_call(
        rnn_fc_kernel,
        out_shape=jax.ShapeDtypeStruct((1, Bp), jnp.float32),
        grid=(nb,),
        in_specs=[
            pl.BlockSpec((D, T * TB), lambda i: (0, i)),        # per-tile x slab (lane-dense)
            pl.BlockSpec((H, D), lambda i: (0, 0)),             # W_ih (resident)
            pl.BlockSpec((H, H), lambda i: (0, 0)),             # W_hh (resident)
            pl.BlockSpec((H, 1), lambda i: (0, 0)),             # b_ih + b_hh
            pl.BlockSpec((1, H), lambda i: (0, 0)),             # W_fc
            pl.BlockSpec(memory_space=pltpu.MemorySpace.SMEM),  # b_fc scalar
        ],
        out_specs=pl.BlockSpec((1, TB), lambda i: (0, i)),      # lane-dense out block
        scratch_shapes=[pltpu.VMEM((H, T * TB), jnp.float32)],  # hoisted projection
        compiler_params=pltpu.CompilerParams(
            dimension_semantics=("parallel",)),                 # v7x: split batch tiles
    )(x_packed, wih, whh, b_comb, wfc, bfc)

    return out_p[0, :B].reshape(B, 1)


def init_params(key, input_size, hidden=HIDDEN):
    # PyTorch nn.RNN / nn.Linear default init: U(-1/sqrt(fan), 1/sqrt(fan)).
    k1, k2, k3, k4, k5, k6 = jax.random.split(key, 6)
    s_rnn = 1.0 / jnp.sqrt(hidden)
    s_fc = 1.0 / jnp.sqrt(hidden)
    return {
        "w_ih": jax.random.uniform(k1, (hidden, input_size), jnp.float32, -s_rnn, s_rnn),
        "w_hh": jax.random.uniform(k2, (hidden, hidden), jnp.float32, -s_rnn, s_rnn),
        "b_ih": jax.random.uniform(k3, (hidden,), jnp.float32, -s_rnn, s_rnn),
        "b_hh": jax.random.uniform(k4, (hidden,), jnp.float32, -s_rnn, s_rnn),
        "w_fc": jax.random.uniform(k5, (1, hidden), jnp.float32, -s_fc, s_fc),
        "b_fc": jax.random.uniform(k6, (1,), jnp.float32, -s_fc, s_fc),
    }


def _reference_forward(x, params):
    # Pure-JAX reference (same math, no Pallas).
    w_ih, w_hh, b_ih, b_hh, w_fc, b_fc = (
        params["w_ih"], params["w_hh"], params["b_ih"],
        params["b_hh"], params["w_fc"], params["b_fc"])
    B, T, D = x.shape
    h = jnp.zeros((B, HIDDEN), jnp.float32)
    for t in range(T):
        h = jnp.tanh(x[:, t, :] @ w_ih.T + h @ w_hh.T + b_ih + b_hh)
    return h @ w_fc.T + b_fc


if __name__ == "__main__":
    key = jax.random.PRNGKey(0)
    kx, kp = jax.random.split(key)

    B, T, D = 2, 8, 4          # batch=2, seq=8, input_size=4
    x = jax.random.normal(kx, (B, T, D), jnp.float32)
    params = init_params(kp, input_size=D)

    out = rnn_model_forward(x, params)
    out = jax.block_until_ready(out)

    ref = _reference_forward(x, params)
    assert out.shape == (B, 1)
    assert jnp.allclose(out, ref, atol=1e-5, rtol=1e-5)

    print("KERNEL_OK")
</pallas_src>

<mosaic_0001>
module attributes {stable_mosaic.version = 11 : i64} {
  func.func @rnn_fc_kernel(%arg0: i32, %arg1: memref<4x1024xf32, #tpu.memory_space<vmem>>, %arg2: memref<6x4xf32, #tpu.memory_space<vmem>>, %arg3: memref<6x6xf32, #tpu.memory_space<vmem>>, %arg4: memref<6x1xf32, #tpu.memory_space<vmem>>, %arg5: memref<1x6xf32, #tpu.memory_space<vmem>>, %arg6: memref<1xf32, #tpu.memory_space<smem>>, %arg7: memref<1x128xf32, #tpu.memory_space<vmem>>, %arg8: memref<6x1024xf32, #tpu.memory_space<vmem>>) attributes {dimension_semantics = [#tpu.dimension_semantics<parallel>], iteration_bounds = array<i64: 1>, scalar_prefetch = 0 : i64, scratch_operands = 1 : i64, tpu.core_type = #tpu.core_type<tc>, window_params = [{transform_indices = @transform_0, window_bounds = array<i64: 4, 1024>}, {pipeline_mode = #tpu.pipeline_mode<synchronous>, transform_indices = @transform_1, window_bounds = array<i64: 6, 4>}, {pipeline_mode = #tpu.pipeline_mode<synchronous>, transform_indices = @transform_2, window_bounds = array<i64: 6, 6>}, {pipeline_mode = #tpu.pipeline_mode<synchronous>, transform_indices = @transform_3, window_bounds = array<i64: 6, 1>}, {pipeline_mode = #tpu.pipeline_mode<synchronous>, transform_indices = @transform_4, window_bounds = array<i64: 1, 6>}, {transform_indices = @transform_5, window_bounds = array<i64: 1>}, {transform_indices = @transform_6, window_bounds = array<i64: 1, 128>}]} {
    %c0 = arith.constant 0 : index
    %c0_0 = arith.constant 0 : index
    %0 = vector.load %arg2[%c0, %c0_0] : memref<6x4xf32, #tpu.memory_space<vmem>>, vector<6x4xf32>
    %c0_1 = arith.constant 0 : index
    %c0_2 = arith.constant 0 : index
    %1 = vector.load %arg1[%c0_1, %c0_2] : memref<4x1024xf32, #tpu.memory_space<vmem>>, vector<4x1024xf32>
    %cst = arith.constant dense<0.000000e+00> : vector<6x1024xf32>
    %2 = tpu.matmul %0, %1, %cst {dimension_numbers = #tpu.dot_dimension_numbers<[1], [0], [0], [1], [0, 0, 1, 1], [], []>} : vector<6x4xf32>, vector<4x1024xf32>, vector<6x1024xf32> -> vector<6x1024xf32>
    %c0_3 = arith.constant 0 : index
    %c0_4 = arith.constant 0 : index
    %3 = vector.load %arg4[%c0_3, %c0_4] : memref<6x1xf32, #tpu.memory_space<vmem>>, vector<6x1xf32>
    %4 = vector.broadcast %3 : vector<6x1xf32> to vector<6x1024xf32>
    %5 = arith.addf %2, %4 : vector<6x1024xf32>
    %c0_5 = arith.constant 0 : index
    %c0_6 = arith.constant 0 : index
    %6 = vector.load %arg8[%c0_5, %c0_6] : memref<6x1024xf32, #tpu.memory_space<vmem>>, vector<6x1024xf32>
    tpu.vector_store %arg8[%c0_5, %c0_6], %5 {strides = array<i32>} : memref<6x1024xf32, #tpu.memory_space<vmem>>, vector<6x1024xf32>,
    %c0_7 = arith.constant 0 : index
    %c0_8 = arith.constant 0 : index
    %7 = vector.load %arg3[%c0_7, %c0_8] : memref<6x6xf32, #tpu.memory_space<vmem>>, vector<6x6xf32>
    %cst_9 = arith.constant 0.000000e+00 : f32
    %8 = vector.broadcast %cst_9 : f32 to vector<6x128xf32>
    %c0_10 = arith.constant 0 : index
    %c0_11 = arith.constant 0 : index
    %9 = vector.load %arg8[%c0_10, %c0_11] : memref<6x1024xf32, #tpu.memory_space<vmem>>, vector<6x128xf32>
    %10 = vector.extract_strided_slice %7 {offsets = [0, 0], sizes = [6, 1], strides = [1, 1]} : vector<6x6xf32> to vector<6x1xf32>
    %11 = vector.extract_strided_slice %8 {offsets = [0, 0], sizes = [1, 128], strides = [1, 1]} : vector<6x128xf32> to vector<1x128xf32>
    %12 = vector.broadcast %10 : vector<6x1xf32> to vector<6x128xf32>
    %13 = vector.broadcast %11 : vector<1x128xf32> to vector<6x128xf32>
    %14 = arith.mulf %12, %13 : vector<6x128xf32>
    %15 = arith.addf %9, %14 : vector<6x128xf32>
    %16 = vector.extract_strided_slice %7 {offsets = [0, 1], sizes = [6, 1], strides = [1, 1]} : vector<6x6xf32> to vector<6x1xf32>
    %17 = vector.extract_strided_slice %8 {offsets = [1, 0], sizes = [1, 128], strides = [1, 1]} : vector<6x128xf32> to vector<1x128xf32>
    %18 = vector.broadcast %16 : vector<6x1xf32> to vector<6x128xf32>
    %19 = vector.broadcast %17 : vector<1x128xf32> to vector<6x128xf32>
    %20 = arith.mulf %18, %19 : vector<6x128xf32>
    %21 = arith.addf %15, %20 : vector<6x128xf32>
    %22 = vector.extract_strided_slice %7 {offsets = [0, 2], sizes = [6, 1], strides = [1, 1]} : vector<6x6xf32> to vector<6x1xf32>
    %23 = vector.extract_strided_slice %8 {offsets = [2, 0], sizes = [1, 128], strides = [1, 1]} : vector<6x128xf32> to vector<1x128xf32>
    %24 = vector.broadcast %22 : vector<6x1xf32> to vector<6x128xf32>
    %25 = vector.broadcast %23 : vector<1x128xf32> to vector<6x128xf32>
    %26 = arith.mulf %24, %25 : vector<6x128xf32>
    %27 = arith.addf %21, %26 : vector<6x128xf32>
    %28 = vector.extract_strided_slice %7 {offsets = [0, 3], sizes = [6, 1], strides = [1, 1]} : vector<6x6xf32> to vector<6x1xf32>
    %29 = vector.extract_strided_slice %8 {offsets = [3, 0], sizes = [1, 128], strides = [1, 1]} : vector<6x128xf32> to vector<1x128xf32>
    %30 = vector.broadcast %28 : vector<6x1xf32> to vector<6x128xf32>
    %31 = vector.broadcast %29 : vector<1x128xf32> to vector<6x128xf32>
    %32 = arith.mulf %30, %31 : vector<6x128xf32>
    %33 = arith.addf %27, %32 : vector<6x128xf32>
    %34 = vector.extract_strided_slice %7 {offsets = [0, 4], sizes = [6, 1], strides = [1, 1]} : vector<6x6xf32> to vector<6x1xf32>
    %35 = vector.extract_strided_slice %8 {offsets = [4, 0], sizes = [1, 128], strides = [1, 1]} : vector<6x128xf32> to vector<1x128xf32>
    %36 = vector.broadcast %34 : vector<6x1xf32> to vector<6x128xf32>
    %37 = vector.broadcast %35 : vector<1x128xf32> to vector<6x128xf32>
    %38 = arith.mulf %36, %37 : vector<6x128xf32>
    %39 = arith.addf %33, %38 : vector<6x128xf32>
    %40 = vector.extract_strided_slice %7 {offsets = [0, 5], sizes = [6, 1], strides = [1, 1]} : vector<6x6xf32> to vector<6x1xf32>
    %41 = vector.extract_strided_slice %8 {offsets = [5, 0], sizes = [1, 128], strides = [1, 1]} : vector<6x128xf32> to vector<1x128xf32>
    %42 = vector.broadcast %40 : vector<6x1xf32> to vector<6x128xf32>
    %43 = vector.broadcast %41 : vector<1x128xf32> to vector<6x128xf32>
    %44 = arith.mulf %42, %43 : vector<6x128xf32>
    %45 = arith.addf %39, %44 : vector<6x128xf32>
    %46 = math.tanh %45 : vector<6x128xf32>
    %c0_12 = arith.constant 0 : index
    %c128 = arith.constant 128 : index
    %47 = vector.load %arg8[%c0_12, %c128] : memref<6x1024xf32, #tpu.memory_space<vmem>>, vector<6x128xf32>
    %48 = vector.extract_strided_slice %7 {offsets = [0, 0], sizes = [6, 1], strides = [1, 1]} : vector<6x6xf32> to vector<6x1xf32>
    %49 = vector.extract_strided_slice %46 {offsets = [0, 0], sizes = [1, 128], strides = [1, 1]} : vector<6x128xf32> to vector<1x128xf32>
    %50 = vector.broadcast %48 : vector<6x1xf32> to vector<6x128xf32>
    %51 = vector.broadcast %49 : vector<1x128xf32> to vector<6x128xf32>
    %52 = arith.mulf %50, %51 : vector<6x128xf32>
    %53 = arith.addf %47, %52 : vector<6x128xf32>
    %54 = vector.extract_strided_slice %7 {offsets = [0, 1], sizes = [6, 1], strides = [1, 1]} : vector<6x6xf32> to vector<6x1xf32>
    %55 = vector.extract_strided_slice %46 {offsets = [1, 0], sizes = [1, 128], strides = [1, 1]} : vector<6x128xf32> to vector<1x128xf32>
    %56 = vector.broadcast %54 : vector<6x1xf32> to vector<6x128xf32>
    %57 = vector.broadcast %55 : vector<1x128xf32> to vector<6x128xf32>
    %58 = arith.mulf %56, %57 : vector<6x128xf32>
    %59 = arith.addf %53, %58 : vector<6x128xf32>
    %60 = vector.extract_strided_slice %7 {offsets = [0, 2], sizes = [6, 1], strides = [1, 1]} : vector<6x6xf32> to vector<6x1xf32>
    %61 = vector.extract_strided_slice %46 {offsets = [2, 0], sizes = [1, 128], strides = [1, 1]} : vector<6x128xf32> to vector<1x128xf32>
    %62 = vector.broadcast %60 : vector<6x1xf32> to vector<6x128xf32>
    %63 = vector.broadcast %61 : vector<1x128xf32> to vector<6x128xf32>
    %64 = arith.mulf %62, %63 : vector<6x128xf32>
    %65 = arith.addf %59, %64 : vector<6x128xf32>
    %66 = vector.extract_strided_slice %7 {offsets = [0, 3], sizes = [6, 1], strides = [1, 1]} : vector<6x6xf32> to vector<6x1xf32>
    %67 = vector.extract_strided_slice %46 {offsets = [3, 0], sizes = [1, 128], strides = [1, 1]} : vector<6x128xf32> to vector<1x128xf32>
    %68 = vector.broadcast %66 : vector<6x1xf32> to vector<6x128xf32>
    %69 = vector.broadcast %67 : vector<1x128xf32> to vector<6x128xf32>
    %70 = arith.mulf %68, %69 : vector<6x128xf32>
    %71 = arith.addf %65, %70 : vector<6x128xf32>
    %72 = vector.extract_strided_slice %7 {offsets = [0, 4], sizes = [6, 1], strides = [1, 1]} : vector<6x6xf32> to vector<6x1xf32>
    %73 = vector.extract_strided_slice %46 {offsets = [4, 0], sizes = [1, 128], strides = [1, 1]} : vector<6x128xf32> to vector<1x128xf32>
    %74 = vector.broadcast %72 : vector<6x1xf32> to vector<6x128xf32>
    %75 = vector.broadcast %73 : vector<1x128xf32> to vector<6x128xf32>
    %76 = arith.mulf %74, %75 : vector<6x128xf32>
    %77 = arith.addf %71, %76 : vector<6x128xf32>
    %78 = vector.extract_strided_slice %7 {offsets = [0, 5], sizes = [6, 1], strides = [1, 1]} : vector<6x6xf32> to vector<6x1xf32>
    %79 = vector.extract_strided_slice %46 {offsets = [5, 0], sizes = [1, 128], strides = [1, 1]} : vector<6x128xf32> to vector<1x128xf32>
    %80 = vector.broadcast %78 : vector<6x1xf32> to vector<6x128xf32>
    %81 = vector.broadcast %79 : vector<1x128xf32> to vector<6x128xf32>
    %82 = arith.mulf %80, %81 : vector<6x128xf32>
    %83 = arith.addf %77, %82 : vector<6x128xf32>
    %84 = math.tanh %83 : vector<6x128xf32>
    %c0_13 = arith.constant 0 : index
    %c256 = arith.constant 256 : index
    %85 = vector.load %arg8[%c0_13, %c256] : memref<6x1024xf32, #tpu.memory_space<vmem>>, vector<6x128xf32>
    %86 = vector.extract_strided_slice %7 {offsets = [0, 0], sizes = [6, 1], strides = [1, 1]} : vector<6x6xf32> to vector<6x1xf32>
    %87 = vector.extract_strided_slice %84 {offsets = [0, 0], sizes = [1, 128], strides = [1, 1]} : vector<6x128xf32> to vector<1x128xf32>
    %88 = vector.broadcast %86 : vector<6x1xf32> to vector<6x128xf32>
    %89 = vector.broadcast %87 : vector<1x128xf32> to vector<6x128xf32>
    %90 = arith.mulf %88, %89 : vector<6x128xf32>
    %91 = arith.addf %85, %90 : vector<6x128xf32>
    %92 = vector.extract_strided_slice %7 {offsets = [0, 1], sizes = [6, 1], strides = [1, 1]} : vector<6x6xf32> to vector<6x1xf32>
    %93 = vector.extract_strided_slice %84 {offsets = [1, 0], sizes = [1, 128], strides = [1, 1]} : vector<6x128xf32> to vector<1x128xf32>
    %94 = vector.broadcast %92 : vector<6x1xf32> to vector<6x128xf32>
    %95 = vector.broadcast %93 : vector<1x128xf32> to vector<6x128xf32>
    %96 = arith.mulf %94, %95 : vector<6x128xf32>
    %97 = arith.addf %91, %96 : vector<6x128xf32>
    %98 = vector.extract_strided_slice %7 {offsets = [0, 2], sizes = [6, 1], strides = [1, 1]} : vector<6x6xf32> to vector<6x1xf32>
    %99 = vector.extract_strided_slice %84 {offsets = [2, 0], sizes = [1, 128], strides = [1, 1]} : vector<6x128xf32> to vector<1x128xf32>
    %100 = vector.broadcast %98 : vector<6x1xf32> to vector<6x128xf32>
    %101 = vector.broadcast %99 : vector<1x128xf32> to vector<6x128xf32>
    %102 = arith.mulf %100, %101 : vector<6x128xf32>
    %103 = arith.addf %97, %102 : vector<6x128xf32>
    %104 = vector.extract_strided_slice %7 {offsets = [0, 3], sizes = [6, 1], strides = [1, 1]} : vector<6x6xf32> to vector<6x1xf32>
    %105 = vector.extract_strided_slice %84 {offsets = [3, 0], sizes = [1, 128], strides = [1, 1]} : vector<6x128xf32> to vector<1x128xf32>
    %106 = vector.broadcast %104 : vector<6x1xf32> to vector<6x128xf32>
    %107 = vector.broadcast %105 : vector<1x128xf32> to vector<6x128xf32>
    %108 = arith.mulf %106, %107 : vector<6x128xf32>
    %109 = arith.addf %103, %108 : vector<6x128xf32>
    %110 = vector.extract_strided_slice %7 {offsets = [0, 4], sizes = [6, 1], strides = [1, 1]} : vector<6x6xf32> to vector<6x1xf32>
    %111 = vector.extract_strided_slice %84 {offsets = [4, 0], sizes = [1, 128], strides = [1, 1]} : vector<6x128xf32> to vector<1x128xf32>
    %112 = vector.broadcast %110 : vector<6x1xf32> to vector<6x128xf32>
    %113 = vector.broadcast %111 : vector<1x128xf32> to vector<6x128xf32>
    %114 = arith.mulf %112, %113 : vector<6x128xf32>
    %115 = arith.addf %109, %114 : vector<6x128xf32>
    %116 = vector.extract_strided_slice %7 {offsets = [0, 5], sizes = [6, 1], strides = [1, 1]} : vector<6x6xf32> to vector<6x1xf32>
    %117 = vector.extract_strided_slice %84 {offsets = [5, 0], sizes = [1, 128], strides = [1, 1]} : vector<6x128xf32> to vector<1x128xf32>
    %118 = vector.broadcast %116 : vector<6x1xf32> to vector<6x128xf32>
    %119 = vector.broadcast %117 : vector<1x128xf32> to vector<6x128xf32>
    %120 = arith.mulf %118, %119 : vector<6x128xf32>
    %121 = arith.addf %115, %120 : vector<6x128xf32>
    %122 = math.tanh %121 : vector<6x128xf32>
    %c0_14 = arith.constant 0 : index
    %c384 = arith.constant 384 : index
    %123 = vector.load %arg8[%c0_14, %c384] : memref<6x1024xf32, #tpu.memory_space<vmem>>, vector<6x128xf32>
    %124 = vector.extract_strided_slice %7 {offsets = [0, 0], sizes = [6, 1], strides = [1, 1]} : vector<6x6xf32> to vector<6x1xf32>
    %125 = vector.extract_strided_slice %122 {offsets = [0, 0], sizes = [1, 128], strides = [1, 1]} : vector<6x128xf32> to vector<1x128xf32>
    %126 = vector.broadcast %124 : vector<6x1xf32> to vector<6x128xf32>
    %127 = vector.broadcast %125 : vector<1x128xf32> to vector<6x128xf32>
    %128 = arith.mulf %126, %127 : vector<6x128xf32>
    %129 = arith.addf %123, %128 : vector<6x128xf32>
    %130 = vector.extract_strided_slice %7 {offsets = [0, 1], sizes = [6, 1], strides = [1, 1]} : vector<6x6xf32> to vector<6x1xf32>
    %131 = vector.extract_strided_slice %122 {offsets = [1, 0], sizes = [1, 128], strides = [1, 1]} : vector<6x128xf32> to vector<1x128xf32>
    %132 = vector.broadcast %130 : vector<6x1xf32> to vector<6x128xf32>
    %133 = vector.broadcast %131 : vector<1x128xf32> to vector<6x128xf32>
    %134 = arith.mulf %132, %133 : vector<6x128xf32>
    %135 = arith.addf %129, %134 : vector<6x128xf32>
    %136 = vector.extract_strided_slice %7 {offsets = [0, 2], sizes = [6, 1], strides = [1, 1]} : vector<6x6xf32> to vector<6x1xf32>
    %137 = vector.extract_strided_slice %122 {offsets = [2, 0], sizes = [1, 128], strides = [1, 1]} : vector<6x128xf32> to vector<1x128xf32>
    %138 = vector.broadcast %136 : vector<6x1xf32> to vector<6x128xf32>
    %139 = vector.broadcast %137 : vector<1x128xf32> to vector<6x128xf32>
    %140 = arith.mulf %138, %139 : vector<6x128xf32>
    %141 = arith.addf %135, %140 : vector<6x128xf32>
    %142 = vector.extract_strided_slice %7 {offsets = [0, 3], sizes = [6, 1], strides = [1, 1]} : vector<6x6xf32> to vector<6x1xf32>
    %143 = vector.extract_strided_slice %122 {offsets = [3, 0], sizes = [1, 128], strides = [1, 1]} : vector<6x128xf32> to vector<1x128xf32>
    %144 = vector.broadcast %142 : vector<6x1xf32> to vector<6x128xf32>
    %145 = vector.broadcast %143 : vector<1x128xf32> to vector<6x128xf32>
    %146 = arith.mulf %144, %145 : vector<6x128xf32>
    %147 = arith.addf %141, %146 : vector<6x128xf32>
    %148 = vector.extract_strided_slice %7 {offsets = [0, 4], sizes = [6, 1], strides = [1, 1]} : vector<6x6xf32> to vector<6x1xf32>
    %149 = vector.extract_strided_slice %122 {offsets = [4, 0], sizes = [1, 128], strides = [1, 1]} : vector<6x128xf32> to vector<1x128xf32>
    %150 = vector.broadcast %148 : vector<6x1xf32> to vector<6x128xf32>
    %151 = vector.broadcast %149 : vector<1x128xf32> to vector<6x128xf32>
    %152 = arith.mulf %150, %151 : vector<6x128xf32>
    %153 = arith.addf %147, %152 : vector<6x128xf32>
    %154 = vector.extract_strided_slice %7 {offsets = [0, 5], sizes = [6, 1], strides = [1, 1]} : vector<6x6xf32> to vector<6x1xf32>
    %155 = vector.extract_strided_slice %122 {offsets = [5, 0], sizes = [1, 128], strides = [1, 1]} : vector<6x128xf32> to vector<1x128xf32>
    %156 = vector.broadcast %154 : vector<6x1xf32> to vector<6x128xf32>
    %157 = vector.broadcast %155 : vector<1x128xf32> to vector<6x128xf32>
    %158 = arith.mulf %156, %157 : vector<6x128xf32>
    %159 = arith.addf %153, %158 : vector<6x128xf32>
    %160 = math.tanh %159 : vector<6x128xf32>
    %c0_15 = arith.constant 0 : index
    %c512 = arith.constant 512 : index
    %161 = vector.load %arg8[%c0_15, %c512] : memref<6x1024xf32, #tpu.memory_space<vmem>>, vector<6x128xf32>
    %162 = vector.extract_strided_slice %7 {offsets = [0, 0], sizes = [6, 1], strides = [1, 1]} : vector<6x6xf32> to vector<6x1xf32>
    %163 = vector.extract_strided_slice %160 {offsets = [0, 0], sizes = [1, 128], strides = [1, 1]} : vector<6x128xf32> to vector<1x128xf32>
    %164 = vector.broadcast %162 : vector<6x1xf32> to vector<6x128xf32>
    %165 = vector.broadcast %163 : vector<1x128xf32> to vector<6x128xf32>
    %166 = arith.mulf %164, %165 : vector<6x128xf32>
    %167 = arith.addf %161, %166 : vector<6x128xf32>
    %168 = vector.extract_strided_slice %7 {offsets = [0, 1], sizes = [6, 1], strides = [1, 1]} : vector<6x6xf32> to vector<6x1xf32>
    %169 = vector.extract_strided_slice %160 {offsets = [1, 0], sizes = [1, 128], strides = [1, 1]} : vector<6x128xf32> to vector<1x128xf32>
    %170 = vector.broadcast %168 : vector<6x1xf32> to vector<6x128xf32>
    %171 = vector.broadcast %169 : vector<1x128xf32> to vector<6x128xf32>
    %172 = arith.mulf %170, %171 : vector<6x128xf32>
    %173 = arith.addf %167, %172 : vector<6x128xf32>
    %174 = vector.extract_strided_slice %7 {offsets = [0, 2], sizes = [6, 1], strides = [1, 1]} : vector<6x6xf32> to vector<6x1xf32>
    %175 = vector.extract_strided_slice %160 {offsets = [2, 0], sizes = [1, 128], strides = [1, 1]} : vector<6x128xf32> to vector<1x128xf32>
    %176 = vector.broadcast %174 : vector<6x1xf32> to vector<6x128xf32>
    %177 = vector.broadcast %175 : vector<1x128xf32> to vector<6x128xf32>
    %178 = arith.mulf %176, %177 : vector<6x128xf32>
    %179 = arith.addf %173, %178 : vector<6x128xf32>
    %180 = vector.extract_strided_slice %7 {offsets = [0, 3], sizes = [6, 1], strides = [1, 1]} : vector<6x6xf32> to vector<6x1xf32>
    %181 = vector.extract_strided_slice %160 {offsets = [3, 0], sizes = [1, 128], strides = [1, 1]} : vector<6x128xf32> to vector<1x128xf32>
    %182 = vector.broadcast %180 : vector<6x1xf32> to vector<6x128xf32>
    %183 = vector.broadcast %181 : vector<1x128xf32> to vector<6x128xf32>
    %184 = arith.mulf %182, %183 : vector<6x128xf32>
    %185 = arith.addf %179, %184 : vector<6x128xf32>
    %186 = vector.extract_strided_slice %7 {offsets = [0, 4], sizes = [6, 1], strides = [1, 1]} : vector<6x6xf32> to vector<6x1xf32>
    %187 = vector.extract_strided_slice %160 {offsets = [4, 0], sizes = [1, 128], strides = [1, 1]} : vector<6x128xf32> to vector<1x128xf32>
    %188 = vector.broadcast %186 : vector<6x1xf32> to vector<6x128xf32>
    %189 = vector.broadcast %187 : vector<1x128xf32> to vector<6x128xf32>
    %190 = arith.mulf %188, %189 : vector<6x128xf32>
    %191 = arith.addf %185, %190 : vector<6x128xf32>
    %192 = vector.extract_strided_slice %7 {offsets = [0, 5], sizes = [6, 1], strides = [1, 1]} : vector<6x6xf32> to vector<6x1xf32>
    %193 = vector.extract_strided_slice %160 {offsets = [5, 0], sizes = [1, 128], strides = [1, 1]} : vector<6x128xf32> to vector<1x128xf32>
    %194 = vector.broadcast %192 : vector<6x1xf32> to vector<6x128xf32>
    %195 = vector.broadcast %193 : vector<1x128xf32> to vector<6x128xf32>
    %196 = arith.mulf %194, %195 : vector<6x128xf32>
    %197 = arith.addf %191, %196 : vector<6x128xf32>
    %198 = math.tanh %197 : vector<6x128xf32>
    %c0_16 = arith.constant 0 : index
    %c640 = arith.constant 640 : index
    %199 = vector.load %arg8[%c0_16, %c640] : memref<6x1024xf32, #tpu.memory_space<vmem>>, vector<6x128xf32>
    %200 = vector.extract_strided_slice %7 {offsets = [0, 0], sizes = [6, 1], strides = [1, 1]} : vector<6x6xf32> to vector<6x1xf32>
    %201 = vector.extract_strided_slice %198 {offsets = [0, 0], sizes = [1, 128], strides = [1, 1]} : vector<6x128xf32> to vector<1x128xf32>
    %202 = vector.broadcast %200 : vector<6x1xf32> to vector<6x128xf32>
    %203 = vector.broadcast %201 : vector<1x128xf32> to vector<6x128xf32>
    %204 = arith.mulf %202, %203 : vector<6x128xf32>
    %205 = arith.addf %199, %204 : vector<6x128xf32>
    %206 = vector.extract_strided_slice %7 {offsets = [0, 1], sizes = [6, 1], strides = [1, 1]} : vector<6x6xf32> to vector<6x1xf32>
    %207 = vector.extract_strided_slice %198 {offsets = [1, 0], sizes = [1, 128], strides = [1, 1]} : vector<6x128xf32> to vector<1x128xf32>
    %208 = vector.broadcast %206 : vector<6x1xf32> to vector<6x128xf32>
    %209 = vector.broadcast %207 : vector<1x128xf32> to vector<6x128xf32>
    %210 = arith.mulf %208, %209 : vector<6x128xf32>
    %211 = arith.addf %205, %210 : vector<6x128xf32>
    %212 = vector.extract_strided_slice %7 {offsets = [0, 2], sizes = [6, 1], strides = [1, 1]} : vector<6x6xf32> to vector<6x1xf32>
    %213 = vector.extract_strided_slice %198 {offsets = [2, 0], sizes = [1, 128], strides = [1, 1]} : vector<6x128xf32> to vector<1x128xf32>
    %214 = vector.broadcast %212 : vector<6x1xf32> to vector<6x128xf32>
    %215 = vector.broadcast %213 : vector<1x128xf32> to vector<6x128xf32>
    %216 = arith.mulf %214, %215 : vector<6x128xf32>
    %217 = arith.addf %211, %216 : vector<6x128xf32>
    %218 = vector.extract_strided_slice %7 {offsets = [0, 3], sizes = [6, 1], strides = [1, 1]} : vector<6x6xf32> to vector<6x1xf32>
    %219 = vector.extract_strided_slice %198 {offsets = [3, 0], sizes = [1, 128], strides = [1, 1]} : vector<6x128xf32> to vector<1x128xf32>
    %220 = vector.broadcast %218 : vector<6x1xf32> to vector<6x128xf32>
    %221 = vector.broadcast %219 : vector<1x128xf32> to vector<6x128xf32>
    %222 = arith.mulf %220, %221 : vector<6x128xf32>
    %223 = arith.addf %217, %222 : vector<6x128xf32>
    %224 = vector.extract_strided_slice %7 {offsets = [0, 4], sizes = [6, 1], strides = [1, 1]} : vector<6x6xf32> to vector<6x1xf32>
    %225 = vector.extract_strided_slice %198 {offsets = [4, 0], sizes = [1, 128], strides = [1, 1]} : vector<6x128xf32> to vector<1x128xf32>
    %226 = vector.broadcast %224 : vector<6x1xf32> to vector<6x128xf32>
    %227 = vector.broadcast %225 : vector<1x128xf32> to vector<6x128xf32>
    %228 = arith.mulf %226, %227 : vector<6x128xf32>
    %229 = arith.addf %223, %228 : vector<6x128xf32>
    %230 = vector.extract_strided_slice %7 {offsets = [0, 5], sizes = [6, 1], strides = [1, 1]} : vector<6x6xf32> to vector<6x1xf32>
    %231 = vector.extract_strided_slice %198 {offsets = [5, 0], sizes = [1, 128], strides = [1, 1]} : vector<6x128xf32> to vector<1x128xf32>
    %232 = vector.broadcast %230 : vector<6x1xf32> to vector<6x128xf32>
    %233 = vector.broadcast %231 : vector<1x128xf32> to vector<6x128xf32>
    %234 = arith.mulf %232, %233 : vector<6x128xf32>
    %235 = arith.addf %229, %234 : vector<6x128xf32>
    %236 = math.tanh %235 : vector<6x128xf32>
    %c0_17 = arith.constant 0 : index
    %c768 = arith.constant 768 : index
    %237 = vector.load %arg8[%c0_17, %c768] : memref<6x1024xf32, #tpu.memory_space<vmem>>, vector<6x128xf32>
    %238 = vector.extract_strided_slice %7 {offsets = [0, 0], sizes = [6, 1], strides = [1, 1]} : vector<6x6xf32> to vector<6x1xf32>
    %239 = vector.extract_strided_slice %236 {offsets = [0, 0], sizes = [1, 128], strides = [1, 1]} : vector<6x128xf32> to vector<1x128xf32>
    %240 = vector.broadcast %238 : vector<6x1xf32> to vector<6x128xf32>
    %241 = vector.broadcast %239 : vector<1x128xf32> to vector<6x128xf32>
    %242 = arith.mulf %240, %241 : vector<6x128xf32>
    %243 = arith.addf %237, %242 : vector<6x128xf32>
    %244 = vector.extract_strided_slice %7 {offsets = [0, 1], sizes = [6, 1], strides = [1, 1]} : vector<6x6xf32> to vector<6x1xf32>
    %245 = vector.extract_strided_slice %236 {offsets = [1, 0], sizes = [1, 128], strides = [1, 1]} : vector<6x128xf32> to vector<1x128xf32>
    %246 = vector.broadcast %244 : vector<6x1xf32> to vector<6x128xf32>
    %247 = vector.broadcast %245 : vector<1x128xf32> to vector<6x128xf32>
    %248 = arith.mulf %246, %247 : vector<6x128xf32>
    %249 = arith.addf %243, %248 : vector<6x128xf32>
    %250 = vector.extract_strided_slice %7 {offsets = [0, 2], sizes = [6, 1], strides = [1, 1]} : vector<6x6xf32> to vector<6x1xf32>
    %251 = vector.extract_strided_slice %236 {offsets = [2, 0], sizes = [1, 128], strides = [1, 1]} : vector<6x128xf32> to vector<1x128xf32>
    %252 = vector.broadcast %250 : vector<6x1xf32> to vector<6x128xf32>
    %253 = vector.broadcast %251 : vector<1x128xf32> to vector<6x128xf32>
    %254 = arith.mulf %252, %253 : vector<6x128xf32>
    %255 = arith.addf %249, %254 : vector<6x128xf32>
    %256 = vector.extract_strided_slice %7 {offsets = [0, 3], sizes = [6, 1], strides = [1, 1]} : vector<6x6xf32> to vector<6x1xf32>
    %257 = vector.extract_strided_slice %236 {offsets = [3, 0], sizes = [1, 128], strides = [1, 1]} : vector<6x128xf32> to vector<1x128xf32>
    %258 = vector.broadcast %256 : vector<6x1xf32> to vector<6x128xf32>
    %259 = vector.broadcast %257 : vector<1x128xf32> to vector<6x128xf32>
    %260 = arith.mulf %258, %259 : vector<6x128xf32>
    %261 = arith.addf %255, %260 : vector<6x128xf32>
    %262 = vector.extract_strided_slice %7 {offsets = [0, 4], sizes = [6, 1], strides = [1, 1]} : vector<6x6xf32> to vector<6x1xf32>
    %263 = vector.extract_strided_slice %236 {offsets = [4, 0], sizes = [1, 128], strides = [1, 1]} : vector<6x128xf32> to vector<1x128xf32>
    %264 = vector.broadcast %262 : vector<6x1xf32> to vector<6x128xf32>
    %265 = vector.broadcast %263 : vector<1x128xf32> to vector<6x128xf32>
    %266 = arith.mulf %264, %265 : vector<6x128xf32>
    %267 = arith.addf %261, %266 : vector<6x128xf32>
    %268 = vector.extract_strided_slice %7 {offsets = [0, 5], sizes = [6, 1], strides = [1, 1]} : vector<6x6xf32> to vector<6x1xf32>
    %269 = vector.extract_strided_slice %236 {offsets = [5, 0], sizes = [1, 128], strides = [1, 1]} : vector<6x128xf32> to vector<1x128xf32>
    %270 = vector.broadcast %268 : vector<6x1xf32> to vector<6x128xf32>
    %271 = vector.broadcast %269 : vector<1x128xf32> to vector<6x128xf32>
    %272 = arith.mulf %270, %271 : vector<6x128xf32>
    %273 = arith.addf %267, %272 : vector<6x128xf32>
    %274 = math.tanh %273 : vector<6x128xf32>
    %c0_18 = arith.constant 0 : index
    %c896 = arith.constant 896 : index
    %275 = vector.load %arg8[%c0_18, %c896] : memref<6x1024xf32, #tpu.memory_space<vmem>>, vector<6x128xf32>
    %276 = vector.extract_strided_slice %7 {offsets = [0, 0], sizes = [6, 1], strides = [1, 1]} : vector<6x6xf32> to vector<6x1xf32>
    %277 = vector.extract_strided_slice %274 {offsets = [0, 0], sizes = [1, 128], strides = [1, 1]} : vector<6x128xf32> to vector<1x128xf32>
    %278 = vector.broadcast %276 : vector<6x1xf32> to vector<6x128xf32>
    %279 = vector.broadcast %277 : vector<1x128xf32> to vector<6x128xf32>
    %280 = arith.mulf %278, %279 : vector<6x128xf32>
    %281 = arith.addf %275, %280 : vector<6x128xf32>
    %282 = vector.extract_strided_slice %7 {offsets = [0, 1], sizes = [6, 1], strides = [1, 1]} : vector<6x6xf32> to vector<6x1xf32>
    %283 = vector.extract_strided_slice %274 {offsets = [1, 0], sizes = [1, 128], strides = [1, 1]} : vector<6x128xf32> to vector<1x128xf32>
    %284 = vector.broadcast %282 : vector<6x1xf32> to vector<6x128xf32>
    %285 = vector.broadcast %283 : vector<1x128xf32> to vector<6x128xf32>
    %286 = arith.mulf %284, %285 : vector<6x128xf32>
    %287 = arith.addf %281, %286 : vector<6x128xf32>
    %288 = vector.extract_strided_slice %7 {offsets = [0, 2], sizes = [6, 1], strides = [1, 1]} : vector<6x6xf32> to vector<6x1xf32>
    %289 = vector.extract_strided_slice %274 {offsets = [2, 0], sizes = [1, 128], strides = [1, 1]} : vector<6x128xf32> to vector<1x128xf32>
    %290 = vector.broadcast %288 : vector<6x1xf32> to vector<6x128xf32>
    %291 = vector.broadcast %289 : vector<1x128xf32> to vector<6x128xf32>
    %292 = arith.mulf %290, %291 : vector<6x128xf32>
    %293 = arith.addf %287, %292 : vector<6x128xf32>
    %294 = vector.extract_strided_slice %7 {offsets = [0, 3], sizes = [6, 1], strides = [1, 1]} : vector<6x6xf32> to vector<6x1xf32>
    %295 = vector.extract_strided_slice %274 {offsets = [3, 0], sizes = [1, 128], strides = [1, 1]} : vector<6x128xf32> to vector<1x128xf32>
    %296 = vector.broadcast %294 : vector<6x1xf32> to vector<6x128xf32>
    %297 = vector.broadcast %295 : vector<1x128xf32> to vector<6x128xf32>
    %298 = arith.mulf %296, %297 : vector<6x128xf32>
    %299 = arith.addf %293, %298 : vector<6x128xf32>
    %300 = vector.extract_strided_slice %7 {offsets = [0, 4], sizes = [6, 1], strides = [1, 1]} : vector<6x6xf32> to vector<6x1xf32>
    %301 = vector.extract_strided_slice %274 {offsets = [4, 0], sizes = [1, 128], strides = [1, 1]} : vector<6x128xf32> to vector<1x128xf32>
    %302 = vector.broadcast %300 : vector<6x1xf32> to vector<6x128xf32>
    %303 = vector.broadcast %301 : vector<1x128xf32> to vector<6x128xf32>
    %304 = arith.mulf %302, %303 : vector<6x128xf32>
    %305 = arith.addf %299, %304 : vector<6x128xf32>
    %306 = vector.extract_strided_slice %7 {offsets = [0, 5], sizes = [6, 1], strides = [1, 1]} : vector<6x6xf32> to vector<6x1xf32>
    %307 = vector.extract_strided_slice %274 {offsets = [5, 0], sizes = [1, 128], strides = [1, 1]} : vector<6x128xf32> to vector<1x128xf32>
    %308 = vector.broadcast %306 : vector<6x1xf32> to vector<6x128xf32>
    %309 = vector.broadcast %307 : vector<1x128xf32> to vector<6x128xf32>
    %310 = arith.mulf %308, %309 : vector<6x128xf32>
    %311 = arith.addf %305, %310 : vector<6x128xf32>
    %312 = math.tanh %311 : vector<6x128xf32>
    %c0_19 = arith.constant 0 : index
    %c0_20 = arith.constant 0 : index
    %313 = vector.load %arg5[%c0_19, %c0_20] : memref<1x6xf32, #tpu.memory_space<vmem>>, vector<1x6xf32>
    %cst_21 = arith.constant dense<0.000000e+00> : vector<1x128xf32>
    %314 = tpu.matmul %313, %312, %cst_21 {dimension_numbers = #tpu.dot_dimension_numbers<[1], [0], [0], [1], [0, 0, 1, 1], [], []>} : vector<1x6xf32>, vector<6x128xf32>, vector<1x128xf32> -> vector<1x128xf32>
    %c0_22 = arith.constant 0 : index
    %315 = memref.load %arg6[%c0_22] : memref<1xf32, #tpu.memory_space<smem>>
    %316 = vector.broadcast %315 : f32 to vector<1x128xf32>
    %317 = arith.addf %314, %316 : vector<1x128xf32>
    %c0_23 = arith.constant 0 : index
    %c0_24 = arith.constant 0 : index
    %318 = vector.load %arg7[%c0_23, %c0_24] : memref<1x128xf32, #tpu.memory_space<vmem>>, vector<1x128xf32>
    tpu.vector_store %arg7[%c0_23, %c0_24], %317 {strides = array<i32>} : memref<1x128xf32, #tpu.memory_space<vmem>>, vector<1x128xf32>,
    return
  }
  func.func @transform_0(%arg0: i32) -> (i32, i32) {
    %c0_i32 = arith.constant 0 : i32
    %c0_i32_0 = arith.constant 0 : i32
    return %c0_i32, %arg0 : i32, i32
  }
  func.func @transform_1(%arg0: i32) -> (i32, i32) {
    %c0_i32 = arith.constant 0 : i32
    %c0_i32_0 = arith.constant 0 : i32
    %c0_i32_1 = arith.constant 0 : i32
    return %c0_i32, %c0_i32_0 : i32, i32
  }
  func.func @transform_2(%arg0: i32) -> (i32, i32) {
    %c0_i32 = arith.constant 0 : i32
    %c0_i32_0 = arith.constant 0 : i32
    %c0_i32_1 = arith.constant 0 : i32
    return %c0_i32, %c0_i32_0 : i32, i32
  }
  func.func @transform_3(%arg0: i32) -> (i32, i32) {
    %c0_i32 = arith.constant 0 : i32
    %c0_i32_0 = arith.constant 0 : i32
    %c0_i32_1 = arith.constant 0 : i32
    return %c0_i32, %c0_i32_0 : i32, i32
  }
  func.func @transform_4(%arg0: i32) -> (i32, i32) {
    %c0_i32 = arith.constant 0 : i32
    %c0_i32_0 = arith.constant 0 : i32
    %c0_i32_1 = arith.constant 0 : i32
    return %c0_i32, %c0_i32_0 : i32, i32
  }
  func.func @transform_5(%arg0: i32) -> i32 {
    %c0_i32 = arith.constant 0 : i32
    %c0_i32_0 = arith.constant 0 : i32
    return %c0_i32 : i32
  }
  func.func @transform_6(%arg0: i32) -> (i32, i32) {
    %c0_i32 = arith.constant 0 : i32
    %c0_i32_0 = arith.constant 0 : i32
    return %c0_i32, %arg0 : i32, i32
  }
}

</mosaic_0001>

<bundles_post_ra>
// kernel: tpu_custom_call.1
= control target key start
LH: loop header
LB: loop body
LE: loop exit
PB: predicated region body
PF: predicated region fallthrough
CT: control target
= control target key end

     0   :  { %12 = vsyncpa [#allocation5], 0  ;;  %s727_s0 = inlined_call_operand.hbm [shape: f32[4,1024], index: 0, kind: input, shape index: {}]   ;;  %s728_s1 = inlined_call_operand.vmem [shape: f32[6,4], index: 1, kind: input, shape index: {}]   ;;  %s729_s2 = inlined_call_operand.vmem [shape: f32[6,6], index: 2, kind: input, shape index: {}]   ;;  %s730_s3 = inlined_call_operand.vmem [shape: f32[6,1], index: 3, kind: input, shape index: {}]   ;;  %s731_s4 = inlined_call_operand.vmem [shape: f32[1,6], index: 4, kind: input, shape index: {}]   ;;  %s732_s5 = inlined_call_operand.<no memory space> [shape: f32[1], index: 5, kind: input, shape index: {}]   ;;  %s733_s6 = inlined_call_operand.hbm [shape: f32[1,128], index: 6, kind: output, shape index: {}]  }
   0x1   :  { %13 = vsyncpa [#allocation6], 0  ;;  %s19_s23 = sshll.u32 %s727_s0, 4  ;;  %s587_s24 = smov [#allocation4]   ;;  %s20_s23 = int_to_ptr.hbm [resolvable:$true] %s19_s23 }
   0x2   :  { %s21_s25 = sshll.u32 %s587_s24, 4  ;;  %s22_s25 = int_to_ptr.vmem [resolvable:$true] %s21_s25 }
   0x3   :  { %24 = dma.hbm_to_vmem [thread:$0]  %s20_s23, 512, %s22_s25, [#allocation5]  }
   0x4   :  { %583 = dma.done.wait [#allocation5], 512  }
   0x5   :  { %584 = vsyncadd [#allocation5], 4294966784  ;;  %v588_v0 = vmov 0   ;;  %v589_v1 = vmov 1   ;;  %v590_v2 = vmov 3   ;;  %v40_v3 = vld [vmem:[#allocation4] sm:$0xff] }
   0x6   :  { %513 = vset.pattern.permute.xlu0 %v588_v0  ;;  %514 = vset.pattern.permute.xlu1 %v589_v1  ;;  %v41_v4 = vld [vmem:[#allocation4 + $0x8] sm:$0xff]  ;;  %54 = vst [vmem:[#allocation1] ss:$2 sm:$0xff] %v40_v3  ;;  %v44_v5 = vld [vmem:[%s730_s3] sm:$0x3f]  ;;  %v42_v6 = vld [vmem:[#allocation4 + $0x10] sm:$0xff] }
   0x7   :  { %516 = vset.pattern.permute.xlu2 %v590_v2  ;;  %v43_v7 = vld [vmem:[#allocation4 + $0x18] sm:$0xff]  ;;  %56 = vst [vmem:[#allocation1 + $0x10] ss:$2 sm:$0xff] %v41_v4  ;;  %47 = vperm.xlu0 %513, %v44_v5   ;;  %vm73_vm0 = vcmask 1043456   ;;  %vm69_vm1 = vcmask 31744   ;;  %v591_v18 = vmov 2  }
   0x8   :  { %v258_v8 = vld [vmem:[%s729_s2] sm:$0x3f]  ;;  %58 = vst [vmem:[#allocation1 + $0x20] ss:$2 sm:$0xff] %v42_v6  ;;  %v592_v19 = vmov 4   ;;  %v593_v20 = vmov 5  }
   0x9   :  { %268 = vperm.xlu1 %514, %v258_v8   ;;  %280 = vperm.xlu2 %516, %v258_v8   ;;  %60 = vst [vmem:[#allocation1 + $0x30] ss:$2 sm:$0xff] %v43_v7  ;;  %v39_v9 = vld [vmem:[%s728_s1] sm:$0x3f]  ;;  %vm445_vm2 = vcmask 1045504   ;;  %vm441_vm3 = vcmask 48128  }
   0xa   :  { %s594_s8 = smov [#allocation7]   ;;  %s477_s12 = sshll.u32 %s733_s6, 4  ;;  %s478_s12 = int_to_ptr.hbm [resolvable:$true] %s477_s12 }
   0xb   :  { %s475_s9 = sshll.u32 %s594_s8, 4  ;;  %s476_s9 = int_to_ptr.vmem [resolvable:$true] %s475_s9 }
   0xd   :  { %v61_v10 = vld.sshfl [vmem:[#allocation1] sm:$0xff pattern:$0x75316420]  ;;  %v62_v11 = vld.sshfl [vmem:[#allocation1 + $0x8] sm:$0xff pattern:$0x75316420] }
   0xe   :  { %487 = vmatpush.msk.msra.mxu0 %vm73_vm0, %v61_v10  ;;  %489 = vmatpush.msk.msra.mxu1 %vm73_vm0, %v62_v11  ;;  %v63_v12 = vld.sshfl [vmem:[#allocation1 + $0x10] sm:$0xff pattern:$0x75316420]  ;;  %v64_v13 = vld.sshfl [vmem:[#allocation1 + $0x18] sm:$0xff pattern:$0x75316420] }
   0xf   :  { %491 = vmatpush.msk.msra.mxu2 %vm73_vm0, %v63_v12  ;;  %493 = vmatpush.msk.msra.mxu3 %vm73_vm0, %v64_v13  ;;  %v65_v14 = vld.sshfl [vmem:[#allocation1 + $0x20] sm:$0xff pattern:$0x75316420]  ;;  %v66_v15 = vld.sshfl [vmem:[#allocation1 + $0x28] sm:$0xff pattern:$0x75316420] }
  0x10   :  { %488 = vmatmul.msk.f32.vlgmr.msra.gmra.mxu0 %vm69_vm1, %v39_v9  ;;  %490 = vmatmul.msk.f32.vlgmr.msra.gmra.mxu1 %vm69_vm1, %v39_v9  ;;  %v67_v16 = vld.sshfl [vmem:[#allocation1 + $0x30] sm:$0xff pattern:$0x75316420]  ;;  %v68_v17 = vld.sshfl [vmem:[#allocation1 + $0x38] sm:$0xff pattern:$0x75316420] }
  0x11   :  { %492 = vmatmul.msk.f32.vlgmr.msra.gmra.mxu2 %vm69_vm1, %v39_v9  ;;  %494 = vmatmul.msk.f32.vlgmr.msra.gmra.mxu3 %vm69_vm1, %v39_v9 }
  0x12   :  { %495 = vmatpush.msk.msrb.mxu0 %vm73_vm0, %v65_v14  ;;  %497 = vmatpush.msk.msrb.mxu1 %vm73_vm0, %v66_v15 }
  0x13   :  { %499 = vmatpush.msk.msrb.mxu2 %vm73_vm0, %v67_v16  ;;  %501 = vmatpush.msk.msrb.mxu3 %vm73_vm0, %v68_v17 }
  0x14   :  { %262 = vperm.xlu0 %513, %v258_v8   ;;  %515 = vset.pattern.permute.xlu1 %v591_v18 }
  0x15   :  { %274 = vperm.xlu1 %515, %v258_v8   ;;  %517 = vset.pattern.permute.xlu2 %v592_v19 }
  0x16   :  { %286 = vperm.xlu2 %517, %v258_v8  }
  0x18   :  { %496 = vmatmul.msk.f32.vlgmr.msrb.gmra.mxu0 %vm69_vm1, %v39_v9  ;;  %498 = vmatmul.msk.f32.vlgmr.msrb.gmra.mxu1 %vm69_vm1, %v39_v9 }
  0x19   :  { %500 = vmatmul.msk.f32.vlgmr.msrb.gmra.mxu2 %vm69_vm1, %v39_v9  ;;  %502 = vmatmul.msk.f32.vlgmr.msrb.gmra.mxu3 %vm69_vm1, %v39_v9 }
  0x1c   :  { %518 = vset.pattern.permute.xlu0 %v593_v20 }
  0x1d   :  { %292 = vperm.xlu0 %518, %v258_v8  }
  0x63   :  { %v660_v27 = vpop.permute.xlu2 %280 }
  0x64   :  { %v283_v46 = vmul.f32 0.0, %v660_v27 }
  0x70   :  { %v669_v43 = vpop.permute.xlu2 %286 }
  0x71   :  { %v289_v50 = vmul.f32 0.0, %v669_v43 }
  0x79   :  { %v48_v21 = vpop.permute.xlu0 %47 }
  0x7b   :  { %v658_v22 = vpop.permute.xlu1 %268 }
  0x7c   :  { %v271_v40 = vmul.f32 0.0, %v658_v22 }
  0x86   :  { %v662_v28 = vpop.permute.xlu0 %262 }
  0x87   :  { %v664_v29 = vpop.permute.xlu1 %274  ;;  %v265_v36 = vmul.f32 0.0, %v662_v28 }
  0x88   :  { %v277_v42 = vmul.f32 0.0, %v664_v29 }
  0x8d   :  { %v107_v23 = vpop.f32.mrf.mxu0  ;;  %v127_v24 = vpop.f32.mrf.mxu1 }
  0x8e   :  { %v108_v25 = vadd.f32 %v107_v23, %v48_v21  ;;  %v128_v26 = vadd.f32 %v127_v24, %v48_v21 }
  0x8f   :  { %v671_v45 = vpop.permute.xlu0 %292 }
  0x90   :  { %250 = vst [vmem:[#allocation2 + $0x30] sm:$0x3f] %v108_v25  ;;  %v295_v54 = vmul.f32 0.0, %v671_v45 }
  0x91   :  { %251 = vst [vmem:[#allocation2] sm:$0x3f] %v128_v26 }
  0x94   :  { %v147_v30 = vpop.f32.mrf.mxu2  ;;  %v167_v31 = vpop.f32.mrf.mxu3 }
  0x95   :  { %v148_v32 = vadd.f32 %v147_v30, %v48_v21  ;;  %v168_v33 = vadd.f32 %v167_v31, %v48_v21  ;;  %v187_v34 = vpop.f32.mrf.mxu0  ;;  %v207_v35 = vpop.f32.mrf.mxu1 }
  0x96   :  { %v188_v37 = vadd.f32 %v187_v34, %v48_v21  ;;  %v208_v38 = vadd.f32 %v207_v35, %v48_v21 }
  0x97   :  { %252 = vst [vmem:[#allocation2 + $0x18] sm:$0x3f] %v148_v32  ;;  %v259_v39 = vld [vmem:[#allocation2 + $0x30] sm:$0x3f] }
  0x98   :  { %253 = vst [vmem:[#allocation2 + $0x10] sm:$0x3f] %v168_v33  ;;  %v266_v41 = vadd.f32 %v265_v36, %v259_v39  ;;  %v298_v62 = vld [vmem:[#allocation2] sm:$0x3f] }
  0x99   :  { %254 = vst [vmem:[#allocation2 + $0x8] sm:$0x3f] %v188_v37 }
  0x9a   :  { %255 = vst [vmem:[#allocation2 + $0x20] sm:$0x3f] %v208_v38  ;;  %v272_v44 = vadd.f32 %v271_v40, %v266_v41 }
  0x9c   :  { %v278_v47 = vadd.f32 %v277_v42, %v272_v44  ;;  %v227_v48 = vpop.f32.mrf.mxu2  ;;  %v247_v49 = vpop.f32.mrf.mxu3 }
  0x9d   :  { %v228_v51 = vadd.f32 %v227_v48, %v48_v21  ;;  %v248_v52 = vadd.f32 %v247_v49, %v48_v21 }
  0x9e   :  { %v284_v53 = vadd.f32 %v283_v46, %v278_v47  ;;  %v318_v18 = vld [vmem:[#allocation2 + $0x18] sm:$0x3f] }
  0x9f   :  { %256 = vst [vmem:[#allocation2 + $0x28] sm:$0x3f] %v228_v51  ;;  %v338_v42 = vld [vmem:[#allocation2 + $0x10] sm:$0x3f] }
  0xa0   :  { %257 = vst [vmem:[#allocation2 + $0x38] sm:$0x3f] %v248_v52  ;;  %v290_v55 = vadd.f32 %v289_v50, %v284_v53 }
  0xa2   :  { %v296_v56 = vadd.f32 %v295_v54, %v290_v55 }
  0xa4   :  { %519 = vtanh.f32 %v296_v56 }
  0xaa   :  { %v520_v57 = vpop.eup %519 }
  0xab   :  { %v299_v58 = vperm.slane %v520_v57, 0  ;;  %v302_v59 = vperm.slane %v520_v57, 1  ;;  %v305_v61 = vperm.slane %v520_v57, 2  ;;  %v308_v1 = vperm.slane %v520_v57, 3 }
  0xac   :  { %v311_v4 = vperm.slane %v520_v57, 4  ;;  %v314_v7 = vperm.slane %v520_v57, 5 }
  0xad   :  { %v300_v60 = vmul.f32 %v299_v58, %v662_v28  ;;  %v303_v0 = vmul.f32 %v302_v59, %v658_v22  ;;  %v306_v3 = vmul.f32 %v305_v61, %v664_v29  ;;  %v309_v6 = vmul.f32 %v308_v1, %v660_v27 }
  0xae   :  { %v312_v9 = vmul.f32 %v311_v4, %v669_v43  ;;  %v315_v11 = vmul.f32 %v314_v7, %v671_v45 }
  0xaf   :  { %v301_v63 = vadd.f32 %v300_v60, %v298_v62 }
  0xb1   :  { %v304_v2 = vadd.f32 %v303_v0, %v301_v63  ;;  %v358_v0 = vld [vmem:[#allocation2 + $0x8] sm:$0x3f] }
  0xb3   :  { %v307_v5 = vadd.f32 %v306_v3, %v304_v2 }
  0xb5   :  { %v310_v8 = vadd.f32 %v309_v6, %v307_v5 }
  0xb7   :  { %v313_v10 = vadd.f32 %v312_v9, %v310_v8 }
  0xb9   :  { %v316_v12 = vadd.f32 %v315_v11, %v313_v10 }
  0xbb   :  { %521 = vtanh.f32 %v316_v12 }
  0xc1   :  { %v522_v13 = vpop.eup %521 }
  0xc2   :  { %v319_v14 = vperm.slane %v522_v13, 0  ;;  %v322_v15 = vperm.slane %v522_v13, 1  ;;  %v325_v17 = vperm.slane %v522_v13, 2  ;;  %v328_v21 = vperm.slane %v522_v13, 3 }
  0xc3   :  { %v331_v25 = vperm.slane %v522_v13, 4  ;;  %v334_v31 = vperm.slane %v522_v13, 5 }
  0xc4   :  { %v320_v16 = vmul.f32 %v319_v14, %v662_v28  ;;  %v323_v20 = vmul.f32 %v322_v15, %v658_v22  ;;  %v326_v24 = vmul.f32 %v325_v17, %v664_v29  ;;  %v329_v30 = vmul.f32 %v328_v21, %v660_v27 }
  0xc5   :  { %v332_v33 = vmul.f32 %v331_v25, %v669_v43  ;;  %v335_v35 = vmul.f32 %v334_v31, %v671_v45 }
  0xc6   :  { %v321_v19 = vadd.f32 %v320_v16, %v318_v18 }
  0xc8   :  { %v324_v23 = vadd.f32 %v323_v20, %v321_v19  ;;  %v378_v20 = vld [vmem:[#allocation2 + $0x20] sm:$0x3f] }
  0xca   :  { %v327_v26 = vadd.f32 %v326_v24, %v324_v23 }
  0xcc   :  { %v330_v32 = vadd.f32 %v329_v30, %v327_v26 }
  0xce   :  { %v333_v34 = vadd.f32 %v332_v33, %v330_v32 }
  0xd0   :  { %v336_v36 = vadd.f32 %v335_v35, %v333_v34 }
  0xd2   :  { %523 = vtanh.f32 %v336_v36 }
  0xd8   :  { %v524_v37 = vpop.eup %523 }
  0xd9   :  { %v339_v38 = vperm.slane %v524_v37, 0  ;;  %v342_v39 = vperm.slane %v524_v37, 1  ;;  %v345_v41 = vperm.slane %v524_v37, 2  ;;  %v348_v47 = vperm.slane %v524_v37, 3 }
  0xda   :  { %v351_v50 = vperm.slane %v524_v37, 4  ;;  %v354_v53 = vperm.slane %v524_v37, 5 }
  0xdb   :  { %v340_v40 = vmul.f32 %v339_v38, %v662_v28  ;;  %v343_v46 = vmul.f32 %v342_v39, %v658_v22  ;;  %v346_v49 = vmul.f32 %v345_v41, %v664_v29  ;;  %v349_v52 = vmul.f32 %v348_v47, %v660_v27 }
  0xdc   :  { %v352_v55 = vmul.f32 %v351_v50, %v669_v43  ;;  %v355_v57 = vmul.f32 %v354_v53, %v671_v45 }
  0xdd   :  { %v341_v44 = vadd.f32 %v340_v40, %v338_v42 }
  0xdf   :  { %v344_v48 = vadd.f32 %v343_v46, %v341_v44  ;;  %v398_v46 = vld [vmem:[#allocation2 + $0x28] sm:$0x3f] }
  0xe1   :  { %v347_v51 = vadd.f32 %v346_v49, %v344_v48 }
  0xe3   :  { %v350_v54 = vadd.f32 %v349_v52, %v347_v51 }
  0xe5   :  { %v353_v56 = vadd.f32 %v352_v55, %v350_v54 }
  0xe7   :  { %v356_v58 = vadd.f32 %v355_v57, %v353_v56 }
  0xe9   :  { %525 = vtanh.f32 %v356_v58 }
  0xef   :  { %v526_v59 = vpop.eup %525 }
  0xf0   :  { %v359_v60 = vperm.slane %v526_v59, 0  ;;  %v362_v61 = vperm.slane %v526_v59, 1  ;;  %v365_v63 = vperm.slane %v526_v59, 2  ;;  %v368_v3 = vperm.slane %v526_v59, 3 }
  0xf1   :  { %v371_v6 = vperm.slane %v526_v59, 4  ;;  %v374_v9 = vperm.slane %v526_v59, 5 }
  0xf2   :  { %v360_v62 = vmul.f32 %v359_v60, %v662_v28  ;;  %v363_v2 = vmul.f32 %v362_v61, %v658_v22  ;;  %v366_v5 = vmul.f32 %v365_v63, %v664_v29  ;;  %v369_v8 = vmul.f32 %v368_v3, %v660_v27 }
  0xf3   :  { %v372_v11 = vmul.f32 %v371_v6, %v669_v43  ;;  %v375_v13 = vmul.f32 %v374_v9, %v671_v45 }
  0xf4   :  { %v361_v1 = vadd.f32 %v360_v62, %v358_v0 }
  0xf6   :  { %v364_v4 = vadd.f32 %v363_v2, %v361_v1  ;;  %v418_v2 = vld [vmem:[#allocation2 + $0x38] sm:$0x3f] }
  0xf8   :  { %v367_v7 = vadd.f32 %v366_v5, %v364_v4 }
  0xfa   :  { %v370_v10 = vadd.f32 %v369_v8, %v367_v7 }
  0xfc   :  { %v373_v12 = vadd.f32 %v372_v11, %v370_v10 }
  0xfe   :  { %v376_v14 = vadd.f32 %v375_v13, %v373_v12 }
 0x100   :  { %527 = vtanh.f32 %v376_v14 }
 0x106   :  { %v528_v15 = vpop.eup %527 }
 0x107   :  { %v379_v16 = vperm.slane %v528_v15, 0  ;;  %v382_v17 = vperm.slane %v528_v15, 1  ;;  %v385_v19 = vperm.slane %v528_v15, 2  ;;  %v388_v24 = vperm.slane %v528_v15, 3 }
 0x108   :  { %v391_v30 = vperm.slane %v528_v15, 4  ;;  %v394_v33 = vperm.slane %v528_v15, 5 }
 0x109   :  { %v380_v18 = vmul.f32 %v379_v16, %v662_v28  ;;  %v383_v23 = vmul.f32 %v382_v17, %v658_v22  ;;  %v386_v26 = vmul.f32 %v385_v19, %v664_v29  ;;  %v389_v32 = vmul.f32 %v388_v24, %v660_v27 }
 0x10a   :  { %v392_v35 = vmul.f32 %v391_v30, %v669_v43  ;;  %v395_v37 = vmul.f32 %v394_v33, %v671_v45 }
 0x10b   :  { %v381_v21 = vadd.f32 %v380_v18, %v378_v20 }
 0x10d   :  { %v384_v25 = vadd.f32 %v383_v23, %v381_v21 }
 0x10f   :  { %v387_v31 = vadd.f32 %v386_v26, %v384_v25 }
 0x111   :  { %v390_v34 = vadd.f32 %v389_v32, %v387_v31 }
 0x113   :  { %v393_v36 = vadd.f32 %v392_v35, %v390_v34 }
 0x115   :  { %v396_v38 = vadd.f32 %v395_v37, %v393_v36 }
 0x117   :  { %529 = vtanh.f32 %v396_v38 }
 0x11d   :  { %v530_v39 = vpop.eup %529 }
 0x11e   :  { %v399_v40 = vperm.slane %v530_v39, 0  ;;  %v402_v41 = vperm.slane %v530_v39, 1  ;;  %v405_v44 = vperm.slane %v530_v39, 2  ;;  %v408_v49 = vperm.slane %v530_v39, 3 }
 0x11f   :  { %v411_v52 = vperm.slane %v530_v39, 4  ;;  %v414_v55 = vperm.slane %v530_v39, 5 }
 0x120   :  { %v400_v42 = vmul.f32 %v399_v40, %v662_v28  ;;  %v403_v48 = vmul.f32 %v402_v41, %v658_v22  ;;  %v406_v51 = vmul.f32 %v405_v44, %v664_v29  ;;  %v409_v54 = vmul.f32 %v408_v49, %v660_v27 }
 0x121   :  { %v412_v57 = vmul.f32 %v411_v52, %v669_v43  ;;  %v415_v59 = vmul.f32 %v414_v55, %v671_v45 }
 0x122   :  { %v401_v47 = vadd.f32 %v400_v42, %v398_v46 }
 0x124   :  { %v404_v50 = vadd.f32 %v403_v48, %v401_v47 }
 0x126   :  { %v407_v53 = vadd.f32 %v406_v51, %v404_v50 }
 0x128   :  { %v410_v56 = vadd.f32 %v409_v54, %v407_v53 }
 0x12a   :  { %v413_v58 = vadd.f32 %v412_v57, %v410_v56 }
 0x12c   :  { %v416_v60 = vadd.f32 %v415_v59, %v413_v58 }
 0x12e   :  { %531 = vtanh.f32 %v416_v60 }
 0x134   :  { %v532_v61 = vpop.eup %531 }
 0x135   :  { %v419_v62 = vperm.slane %v532_v61, 0  ;;  %v422_v63 = vperm.slane %v532_v61, 1  ;;  %v425_v1 = vperm.slane %v532_v61, 2  ;;  %v428_v5 = vperm.slane %v532_v61, 3 }
 0x136   :  { %v431_v8 = vperm.slane %v532_v61, 4  ;;  %v434_v11 = vperm.slane %v532_v61, 5 }
 0x137   :  { %v420_v0 = vmul.f32 %v419_v62, %v662_v28  ;;  %v423_v4 = vmul.f32 %v422_v63, %v658_v22  ;;  %v426_v7 = vmul.f32 %v425_v1, %v664_v29  ;;  %v429_v10 = vmul.f32 %v428_v5, %v660_v27  ;;  %v438_v22 = vld [vmem:[%s731_s4] sm:$0x1] }
 0x138   :  { %v432_v13 = vmul.f32 %v431_v8, %v669_v43  ;;  %v435_v28 = vmul.f32 %v434_v11, %v671_v45  ;;  %v440_v27 = vstv %s732_s5 }
 0x139   :  { %v421_v3 = vadd.f32 %v420_v0, %v418_v2 }
 0x13b   :  { %v424_v6 = vadd.f32 %v423_v4, %v421_v3 }
 0x13d   :  { %v427_v9 = vadd.f32 %v426_v7, %v424_v6 }
 0x13f   :  { %v430_v12 = vadd.f32 %v429_v10, %v427_v9 }
 0x141   :  { %v433_v14 = vadd.f32 %v432_v13, %v430_v12 }
 0x143   :  { %v436_v15 = vadd.f32 %v435_v28, %v433_v14 }
 0x145   :  { %533 = vtanh.f32 %v436_v15 }
 0x14b   :  { %v534_v29 = vpop.eup %533 }
 0x14c   :  { %503 = vmatpush.msk.msra.mxu0 %vm445_vm2, %v534_v29 }
 0x14d   :  { %504 = vmatmul.msk.f32.vlgmr.msra.gmra.mxu0 %vm441_vm3, %v438_v22 }
 0x1ca   :  { %v466_v43 = vpop.f32.mrf.mxu0 }
 0x1cb   :  { %v467_v45 = vadd.f32 %v466_v43, %v440_v27 }
 0x1cd   :  { %469 = vst [vmem:[#allocation7] sm:$0x1] %v467_v45 }
 0x1ce   :  { %480 = dma.vmem_to_hbm [thread:$0]  %s476_s9, 16, %s478_s12, [#allocation6]  }
 0x1cf   :  { %585 = dma.done.wait [#allocation6], 16  }
 0x1d0   :  { %586 = vsyncadd [#allocation6], 4294967280 }
 0x1d1   :  { %485 = vsyncpa [#allocation5], 1 }
 0x1d2   :  { %486 = vsyncpa [#allocation6], 1 }

</bundles_post_ra>
